<compile_context>
chip_gen: v6e
topology: v6e:2x2x1
jax: 0.10.0
libtpu: 0.0.40
codegen_flags: <defaults>
</compile_context>

<pallas_src>
import jax
import jax.numpy as jnp
from jax.experimental import pallas as pl
from jax.experimental.pallas import tpu as pltpu

EMBEDDING_SIZE = 100
NUM_FILTERS = 10
WINDOW_SIZES = (1, 2, 3)
MAXPAD = max(WINDOW_SIZES) - 1                  # zero margin of the in-kernel frame
WCOLS = sum(WINDOW_SIZES) * NUM_FILTERS         # 60: all taps of all windows
NWF = len(WINDOW_SIZES) * NUM_FILTERS           # 30: fc input features


def _kernel(x_ref, wcat_ref, bcat_ref, fcw_ref, fcb_ref, o_ref, z_ref):
    TB, L, E = x_ref.shape                      # static
    F = NUM_FILTERS
    Lp = L + 2 * MAXPAD

    # --- one fused conv matmul for every window size / tap -------------------
    # bf16 operands (cast in VMEM so HBM still streams x only once, as f32),
    # f32 accumulation.  L is a multiple of 8 so the reshape is layout-preserving.
    xb = x_ref[...].astype(jnp.bfloat16)
    y = jnp.dot(xb.reshape(TB * L, E), wcat_ref[...],
                preferred_element_type=jnp.float32)        # (TB*L, WCOLS)
    y = y.reshape(TB, L, WCOLS)

    # --- zero-padded frame in VMEM (replaces the host-side jnp.pad of x) -----
    # frame row q holds the projections of token (q - MAXPAD), zero outside [0, L).
    zeros_margin = jnp.zeros((TB, MAXPAD, WCOLS), jnp.float32)
    z_ref[:, 0:MAXPAD, :] = zeros_margin
    z_ref[:, MAXPAD + L:Lp, :] = zeros_margin
    z_ref[:, MAXPAD:MAXPAD + L, :] = y
    z = z_ref[...]                                         # (TB, Lp, WCOLS)

    # --- per-window conv = shifted adds of tap projections, then global max --
    # conv_w[p] = sum_dw token[p-(w-1)+dw] . W_w[dw]  =  sum_dw z[p + s0 + dw, cols_dw]
    pooled = []
    col = 0
    for w in WINDOW_SIZES:
        T = L + w - 1                  # conv output length with padding (w-1, 0)
        s0 = MAXPAD - (w - 1)          # frame row of tap 0 for conv position p=0
        acc = z[:, s0:s0 + T, col:col + F]
        for dw in range(1, w):
            acc = acc + z[:, s0 + dw:s0 + dw + T,
                          col + dw * F:col + (dw + 1) * F]
        pooled.append(jnp.max(acc, axis=1))                # (TB, F) global max-pool
        col += w * F

    # --- bias + tanh after the pool, then one fused fc matmul ----------------
    feats = jnp.tanh(jnp.concatenate(pooled, axis=-1) + bcat_ref[...])   # (TB, NWF)
    logits = jnp.dot(feats, fcw_ref[...], preferred_element_type=jnp.float32)
    o_ref[...] = logits + fcb_ref[...]


def _round_up(n, m):
    return ((n + m - 1) // m) * m


def cnn_text_classifier(x, params, num_classes, tb=None):
    """Forward pass; returns (logits, 0) like the PyTorch module."""
    B, L, E = x.shape
    assert E == EMBEDDING_SIZE
    F = NUM_FILTERS
    nw = len(WINDOW_SIZES)

    # Batch tile: as large as a conservative VMEM budget allows (double-buffered
    # x block + padded-projection scratch), a multiple of 8 for dense stores,
    # and no larger than the (8-rounded) batch.  The ~8 MiB budget stays under
    # the default scoped VMEM on v5e/v6e/v7x without raising vmem_limit_bytes.
    if tb is None:
        per_sample = 2 * L * E * 4 + 2 * (L + 2 * MAXPAD) * WCOLS * 4
        tb = min(256, max(8, ((8 << 20) // per_sample) // 8 * 8))
    tb = max(8, (tb // 8) * 8)
    tb = min(tb, _round_up(B, 8))
    Bp = _round_up(B, tb)
    x_p = jnp.pad(x, ((0, Bp - B), (0, 0), (0, 0))) if Bp != B else x

    # Conv weights (F, w, E) -> one (E, sum(w)*F) bf16 matrix, window-major then
    # tap-major columns (matches the kernel's `col` bookkeeping); biases -> (1, 30).
    w_cols, b_parts = [], []
    for (W, b) in params["convs"]:
        for dw in range(W.shape[1]):
            w_cols.append(jnp.transpose(W[:, dw, :]))      # (E, F)
        b_parts.append(b)
    w_cat = jnp.concatenate(w_cols, axis=1).astype(jnp.bfloat16)       # (E, WCOLS)
    b_cat = jnp.concatenate(b_parts).reshape(1, NWF).astype(jnp.float32)

    # fc: PyTorch flattens (B, F, nw) row-major -> column f*nw + wi; the kernel's
    # feature order is wi*F + f, so permute the fc weight columns accordingly.
    fc_W, fc_b = params["fc"]
    fc_Wt = jnp.transpose(fc_W.reshape(num_classes, F, nw),
                          (2, 1, 0)).reshape(NWF, num_classes)
    fc_b2 = fc_b.reshape(1, num_classes).astype(jnp.float32)

    out = pl.pallas_call(
        _kernel,
        out_shape=jax.ShapeDtypeStruct((Bp, num_classes), jnp.float32),
        grid=(Bp // tb,),
        in_specs=[
            pl.BlockSpec((tb, L, E), lambda i: (i, 0, 0)),
            pl.BlockSpec((E, WCOLS), lambda i: (0, 0)),
            pl.BlockSpec((1, NWF), lambda i: (0, 0)),
            pl.BlockSpec((NWF, num_classes), lambda i: (0, 0)),
            pl.BlockSpec((1, num_classes), lambda i: (0, 0)),
        ],
        out_specs=pl.BlockSpec((tb, num_classes), lambda i: (i, 0)),
        scratch_shapes=[pltpu.VMEM((tb, L + 2 * MAXPAD, WCOLS), jnp.float32)],
        compiler_params=pltpu.CompilerParams(dimension_semantics=("parallel",)),
    )(x_p, w_cat, b_cat, fc_Wt, fc_b2)
    return out[:B], 0


def reference(x, params, num_classes):
    """Pure-JAX reference mirroring the PyTorch forward (bf16 conv operands and
    f32 accumulation, exactly like the kernel)."""
    B, L, E = x.shape
    F = NUM_FILTERS
    xb = x.astype(jnp.bfloat16)
    feats = []
    for w, (W, b) in zip(WINDOW_SIZES, params["convs"]):
        T = L + w - 1
        xp = jnp.pad(xb, ((0, 0), (w - 1, w - 1), (0, 0)))
        conv = jnp.zeros((B, T, F), jnp.float32)
        for dw in range(w):
            conv = conv + jnp.einsum(
                "ble,fe->blf", xp[:, dw:dw + T, :],
                W[:, dw, :].astype(jnp.bfloat16),
                preferred_element_type=jnp.float32)
        act = jnp.tanh(conv + b[None, None, :])
        feats.append(jnp.max(act, axis=1))                 # (B, F)
    feat = jnp.stack(feats, axis=-1).reshape(B, F * len(WINDOW_SIZES))
    fc_W, fc_b = params["fc"]
    return feat @ fc_W.T + fc_b


def init_params(key, num_classes):
    keys = jax.random.split(key, 8)
    convs = []
    for i, w in enumerate(WINDOW_SIZES):
        fan_in = 1 * w * EMBEDDING_SIZE
        bound = 1.0 / (fan_in ** 0.5)
        W = jax.random.uniform(keys[2 * i], (NUM_FILTERS, w, EMBEDDING_SIZE),
                               minval=-bound, maxval=bound, dtype=jnp.float32)
        b = jax.random.uniform(keys[2 * i + 1], (NUM_FILTERS,),
                               minval=-bound, maxval=bound, dtype=jnp.float32)
        convs.append((W, b))
    fc_in = NUM_FILTERS * len(WINDOW_SIZES)
    bound = 1.0 / (fc_in ** 0.5)
    fc_W = jax.random.uniform(keys[6], (num_classes, fc_in),
                              minval=-bound, maxval=bound, dtype=jnp.float32)
    fc_b = jax.random.uniform(keys[7], (num_classes,),
                              minval=-bound, maxval=bound, dtype=jnp.float32)
    return {"convs": convs, "fc": (fc_W, fc_b)}


if __name__ == "__main__":
    num_classes = 4
    key = jax.random.PRNGKey(0)
    pkey, xkey1, xkey2 = jax.random.split(key, 3)
    params = init_params(pkey, num_classes)

    # Small demo shape (batch tile auto-selected, single grid step).
    B1, L1 = 2, 8
    x1 = jax.random.normal(xkey1, (B1, L1, EMBEDDING_SIZE), dtype=jnp.float32)
    logits1, zero = cnn_text_classifier(x1, params, num_classes)
    logits1 = jax.block_until_ready(logits1)
    ref1 = reference(x1, params, num_classes)
    assert logits1.shape == (B1, num_classes)
    assert zero == 0
    assert jnp.allclose(logits1, ref1, atol=1e-3, rtol=1e-3), (logits1, ref1)

    # Multi-grid-step path: batch padded up to a multiple of the batch tile.
    B2, L2 = 20, 16
    x2 = jax.random.normal(xkey2, (B2, L2, EMBEDDING_SIZE), dtype=jnp.float32)
    logits2, _ = cnn_text_classifier(x2, params, num_classes, tb=8)
    logits2 = jax.block_until_ready(logits2)
    ref2 = reference(x2, params, num_classes)
    assert jnp.allclose(logits2, ref2, atol=1e-3, rtol=1e-3), (logits2, ref2)

    print("KERNEL_OK")
</pallas_src>

<mosaic_0001>
module attributes {stable_mosaic.version = 11 : i64} {
  func.func @_kernel(%arg0: i32, %arg1: memref<8x8x100xf32, #tpu.memory_space<vmem>>, %arg2: memref<100x60xbf16, #tpu.memory_space<vmem>>, %arg3: memref<1x30xf32, #tpu.memory_space<vmem>>, %arg4: memref<30x4xf32, #tpu.memory_space<vmem>>, %arg5: memref<1x4xf32, #tpu.memory_space<vmem>>, %arg6: memref<8x4xf32, #tpu.memory_space<vmem>>, %arg7: memref<8x12x60xf32, #tpu.memory_space<vmem>>) attributes {dimension_semantics = [#tpu.dimension_semantics<parallel>], iteration_bounds = array<i64: 1>, scalar_prefetch = 0 : i64, scratch_operands = 1 : i64, tpu.core_type = #tpu.core_type<tc>, window_params = [{transform_indices = @transform_0, window_bounds = array<i64: 8, 8, 100>}, {pipeline_mode = #tpu.pipeline_mode<synchronous>, transform_indices = @transform_1, window_bounds = array<i64: 100, 60>}, {pipeline_mode = #tpu.pipeline_mode<synchronous>, transform_indices = @transform_2, window_bounds = array<i64: 1, 30>}, {pipeline_mode = #tpu.pipeline_mode<synchronous>, transform_indices = @transform_3, window_bounds = array<i64: 30, 4>}, {pipeline_mode = #tpu.pipeline_mode<synchronous>, transform_indices = @transform_4, window_bounds = array<i64: 1, 4>}, {transform_indices = @transform_5, window_bounds = array<i64: 8, 4>}]} {
    %c0 = arith.constant 0 : index
    %c0_0 = arith.constant 0 : index
    %c0_1 = arith.constant 0 : index
    %0 = vector.load %arg1[%c0, %c0_0, %c0_1] : memref<8x8x100xf32, #tpu.memory_space<vmem>>, vector<8x8x100xf32>
    %1 = arith.truncf %0 : vector<8x8x100xf32> to vector<8x8x100xbf16>
    %2 = vector.shape_cast %1 : vector<8x8x100xbf16> to vector<64x100xbf16>
    %c0_2 = arith.constant 0 : index
    %c0_3 = arith.constant 0 : index
    %3 = vector.load %arg2[%c0_2, %c0_3] : memref<100x60xbf16, #tpu.memory_space<vmem>>, vector<100x60xbf16>
    %cst = arith.constant dense<0.000000e+00> : vector<64x60xf32>
    %4 = tpu.matmul %2, %3, %cst {dimension_numbers = #tpu.dot_dimension_numbers<[1], [0], [0], [1], [0, 0, 1, 1], [], []>} : vector<64x100xbf16>, vector<100x60xbf16>, vector<64x60xf32> -> vector<64x60xf32>
    %5 = vector.shape_cast %4 : vector<64x60xf32> to vector<8x8x60xf32>
    %cst_4 = arith.constant 0.000000e+00 : f32
    %6 = vector.broadcast %cst_4 : f32 to vector<8x2x60xf32>
    %c0_5 = arith.constant 0 : index
    %c0_6 = arith.constant 0 : index
    %c0_7 = arith.constant 0 : index
    %7 = vector.load %arg7[%c0_5, %c0_6, %c0_7] : memref<8x12x60xf32, #tpu.memory_space<vmem>>, vector<8x2x60xf32>
    tpu.vector_store %arg7[%c0_5, %c0_6, %c0_7], %6 {strides = array<i32>} : memref<8x12x60xf32, #tpu.memory_space<vmem>>, vector<8x2x60xf32>,
    %c0_8 = arith.constant 0 : index
    %c10 = arith.constant 10 : index
    %c0_9 = arith.constant 0 : index
    %8 = vector.load %arg7[%c0_8, %c10, %c0_9] : memref<8x12x60xf32, #tpu.memory_space<vmem>>, vector<8x2x60xf32>
    tpu.vector_store %arg7[%c0_8, %c10, %c0_9], %6 {strides = array<i32>} : memref<8x12x60xf32, #tpu.memory_space<vmem>>, vector<8x2x60xf32>,
    %c0_10 = arith.constant 0 : index
    %c2 = arith.constant 2 : index
    %c0_11 = arith.constant 0 : index
    %9 = vector.load %arg7[%c0_10, %c2, %c0_11] : memref<8x12x60xf32, #tpu.memory_space<vmem>>, vector<8x8x60xf32>
    tpu.vector_store %arg7[%c0_10, %c2, %c0_11], %5 {strides = array<i32>} : memref<8x12x60xf32, #tpu.memory_space<vmem>>, vector<8x8x60xf32>,
    %c0_12 = arith.constant 0 : index
    %c0_13 = arith.constant 0 : index
    %c0_14 = arith.constant 0 : index
    %10 = vector.load %arg7[%c0_12, %c0_13, %c0_14] : memref<8x12x60xf32, #tpu.memory_space<vmem>>, vector<8x12x60xf32>
    %11 = vector.extract_strided_slice %10 {offsets = [0, 2, 0], sizes = [8, 8, 10], strides = [1, 1, 1]} : vector<8x12x60xf32> to vector<8x8x10xf32>
    %cst_15 = arith.constant dense<0xFF800000> : vector<8x10xf32>
    %12 = vector.multi_reduction <maximumf>, %11, %cst_15 [1] : vector<8x8x10xf32> to vector<8x10xf32>
    %13 = vector.extract_strided_slice %10 {offsets = [0, 1, 10], sizes = [8, 9, 10], strides = [1, 1, 1]} : vector<8x12x60xf32> to vector<8x9x10xf32>
    %14 = vector.extract_strided_slice %10 {offsets = [0, 2, 20], sizes = [8, 9, 10], strides = [1, 1, 1]} : vector<8x12x60xf32> to vector<8x9x10xf32>
    %15 = arith.addf %13, %14 : vector<8x9x10xf32>
    %cst_16 = arith.constant dense<0xFF800000> : vector<8x10xf32>
    %16 = vector.multi_reduction <maximumf>, %15, %cst_16 [1] : vector<8x9x10xf32> to vector<8x10xf32>
    %17 = vector.extract_strided_slice %10 {offsets = [0, 0, 30], sizes = [8, 10, 10], strides = [1, 1, 1]} : vector<8x12x60xf32> to vector<8x10x10xf32>
    %18 = vector.extract_strided_slice %10 {offsets = [0, 1, 40], sizes = [8, 10, 10], strides = [1, 1, 1]} : vector<8x12x60xf32> to vector<8x10x10xf32>
    %19 = arith.addf %17, %18 : vector<8x10x10xf32>
    %20 = vector.extract_strided_slice %10 {offsets = [0, 2, 50], sizes = [8, 10, 10], strides = [1, 1, 1]} : vector<8x12x60xf32> to vector<8x10x10xf32>
    %21 = arith.addf %19, %20 : vector<8x10x10xf32>
    %cst_17 = arith.constant dense<0xFF800000> : vector<8x10xf32>
    %22 = vector.multi_reduction <maximumf>, %21, %cst_17 [1] : vector<8x10x10xf32> to vector<8x10xf32>
    %23 = tpu.concatenate %12, %16, %22 in 1 : vector<8x10xf32>, vector<8x10xf32>, vector<8x10xf32> -> vector<8x30xf32>
    %c0_18 = arith.constant 0 : index
    %c0_19 = arith.constant 0 : index
    %24 = vector.load %arg3[%c0_18, %c0_19] : memref<1x30xf32, #tpu.memory_space<vmem>>, vector<1x30xf32>
    %25 = vector.broadcast %24 : vector<1x30xf32> to vector<8x30xf32>
    %26 = arith.addf %23, %25 : vector<8x30xf32>
    %27 = math.tanh %26 : vector<8x30xf32>
    %c0_20 = arith.constant 0 : index
    %c0_21 = arith.constant 0 : index
    %28 = vector.load %arg4[%c0_20, %c0_21] : memref<30x4xf32, #tpu.memory_space<vmem>>, vector<30x4xf32>
    %cst_22 = arith.constant dense<0.000000e+00> : vector<8x4xf32>
    %29 = tpu.matmul %27, %28, %cst_22 {dimension_numbers = #tpu.dot_dimension_numbers<[1], [0], [0], [1], [0, 0, 1, 1], [], []>} : vector<8x30xf32>, vector<30x4xf32>, vector<8x4xf32> -> vector<8x4xf32>
    %c0_23 = arith.constant 0 : index
    %c0_24 = arith.constant 0 : index
    %30 = vector.load %arg5[%c0_23, %c0_24] : memref<1x4xf32, #tpu.memory_space<vmem>>, vector<1x4xf32>
    %31 = vector.broadcast %30 : vector<1x4xf32> to vector<8x4xf32>
    %32 = arith.addf %29, %31 : vector<8x4xf32>
    %c0_25 = arith.constant 0 : index
    %c0_26 = arith.constant 0 : index
    %33 = vector.load %arg6[%c0_25, %c0_26] : memref<8x4xf32, #tpu.memory_space<vmem>>, vector<8x4xf32>
    tpu.vector_store %arg6[%c0_25, %c0_26], %32 {strides = array<i32>} : memref<8x4xf32, #tpu.memory_space<vmem>>, vector<8x4xf32>,
    return
  }
  func.func @transform_0(%arg0: i32) -> (i32, i32, i32) {
    %c0_i32 = arith.constant 0 : i32
    %c0_i32_0 = arith.constant 0 : i32
    %c0_i32_1 = arith.constant 0 : i32
    return %arg0, %c0_i32, %c0_i32_0 : i32, i32, i32
  }
  func.func @transform_1(%arg0: i32) -> (i32, i32) {
    %c0_i32 = arith.constant 0 : i32
    %c0_i32_0 = arith.constant 0 : i32
    %c0_i32_1 = arith.constant 0 : i32
    return %c0_i32, %c0_i32_0 : i32, i32
  }
  func.func @transform_2(%arg0: i32) -> (i32, i32) {
    %c0_i32 = arith.constant 0 : i32
    %c0_i32_0 = arith.constant 0 : i32
    %c0_i32_1 = arith.constant 0 : i32
    return %c0_i32, %c0_i32_0 : i32, i32
  }
  func.func @transform_3(%arg0: i32) -> (i32, i32) {
    %c0_i32 = arith.constant 0 : i32
    %c0_i32_0 = arith.constant 0 : i32
    %c0_i32_1 = arith.constant 0 : i32
    return %c0_i32, %c0_i32_0 : i32, i32
  }
  func.func @transform_4(%arg0: i32) -> (i32, i32) {
    %c0_i32 = arith.constant 0 : i32
    %c0_i32_0 = arith.constant 0 : i32
    %c0_i32_1 = arith.constant 0 : i32
    return %c0_i32, %c0_i32_0 : i32, i32
  }
  func.func @transform_5(%arg0: i32) -> (i32, i32) {
    %c0_i32 = arith.constant 0 : i32
    %c0_i32_0 = arith.constant 0 : i32
    return %arg0, %c0_i32 : i32, i32
  }
}

</mosaic_0001>

<bundles_post_ra>
// kernel: tpu_custom_call.1
= control target key start
LH: loop header
LB: loop body
LE: loop exit
PB: predicated region body
PF: predicated region fallthrough
CT: control target
= control target key end

     0   :  { %vm122_vm0 = vcmask 1041408   ;;  %vm109_vm1 = vcmask 818176   ;;  %vm191_vm2 = vcmask 484352   ;;  %v914_v20 = vmov 0.0   ;;  %s1334_s1 = inlined_call_operand.vmem [shape: bf16[100,60], index: 1, kind: input, shape index: {}]   ;;  %s1335_s0 = inlined_call_operand.vmem [shape: f32[8,8,100], index: 0, kind: input, shape index: {}]   ;;  %s1336_s3 = inlined_call_operand.vmem [shape: f32[30,4], index: 3, kind: input, shape index: {}]   ;;  %s1337_s2 = inlined_call_operand.vmem [shape: f32[1,30], index: 2, kind: input, shape index: {}]   ;;  %s1338_s4 = inlined_call_operand.vmem [shape: f32[1,4], index: 4, kind: input, shape index: {}]   ;;  %s1339_s5 = inlined_call_operand.vmem [shape: f32[8,4], index: 5, kind: output, shape index: {}]  }
   0x1   :  { %v905_v0 = vld [vmem:[%s1334_s1 + $0x30] ss:$0 sps:$4 sm:$0x33]   ;;  %v906_v1 = vld [vmem:[%s1334_s1 + $0x28] sm:$0xff]   ;;  %v907_v3 = vld [vmem:[%s1334_s1 + $0x20] sm:$0xff]   ;;  %vm208_vm3 = vcmask 490496  }
   0x2   :  { %899 = vmatprep.subr.msk.bf16.mxu0 %vm122_vm0, %v905_v0  ;;  %900 = vmatprep.subr.msk.bf16.mxu1 %vm122_vm0, %v905_v0  ;;  %v124_v2 = vsel %vm122_vm0, %v905_v0, 0  ;;  %v21_v4 = vld [vmem:[%s1335_s0] sm:$0xff]  ;;  %v22_v5 = vld [vmem:[%s1335_s0 + $0x8] sm:$0xff]  ;;  %v908_v8 = vld [vmem:[%s1334_s1 + $0x18] sm:$0xff]   ;;  %202 = vst.msk [vmem:[#allocation2 + $0x2a] sm:$0x3] %vm191_vm2, %v914_v20 }
   0x3   :  { %853 = vmatpush3.bf16.msra.mxu0 %v124_v2  ;;  %892 = vmatpush3.bf16.msra.mxu1 %v124_v2  ;;  %v25_v6 = vld [vmem:[%s1335_s0 + $0x20] sm:$0xff]  ;;  %v26_v7 = vld [vmem:[%s1335_s0 + $0x28] sm:$0xff]  ;;  %v832_v9 = vpack.c.bf16 %v22_v5, %v21_v4  ;;  %v909_v11 = vld [vmem:[%s1334_s1 + $0x10] sm:$0xff]   ;;  %192 = vst.msk [vmem:[#allocation2] sm:$0x3] %vm191_vm2, %v914_v20  ;;  %vm323_vm4 = vcmask 1046528  }
   0x4   :  { %854 = vmatprep.subr.bf16.mxu0 %v906_v1  ;;  %886 = vmatprep.subr.bf16.mxu1 %v906_v1  ;;  %v834_v10 = vpack.c.bf16 %v26_v7, %v25_v6  ;;  %v910_v12 = vld [vmem:[%s1334_s1 + $0x8] sm:$0xff]   ;;  %v911_v13 = vld [vmem:[%s1334_s1] sm:$0xff]   ;;  %v23_v14 = vld [vmem:[%s1335_s0 + $0x10] sm:$0xff]  ;;  %193 = vst.msk [vmem:[#allocation2 + $0x10] sm:$0x3] %vm191_vm2, %v914_v20  ;;  %vm486_vm5 = vcmask 1045504  }
   0x5   :  { %866 = vmatprep.mubr.msk.bf16.mxu0 %vm109_vm1, %v832_v9  ;;  %v24_v15 = vld [vmem:[%s1335_s0 + $0x18] sm:$0xff]  ;;  %v27_v16 = vld [vmem:[%s1335_s0 + $0x30] sm:$0xff]  ;;  %194 = vst.msk [vmem:[#allocation2 + $0x20] sm:$0x3] %vm191_vm2, %v914_v20  ;;  %195 = vst.msk [vmem:[#allocation2 + $0x30] sm:$0x3] %vm191_vm2, %v914_v20 }
   0x6   :  { %870 = vmatprep.mubr.msk.bf16.mxu1 %vm109_vm1, %v834_v10  ;;  %v28_v17 = vld [vmem:[%s1335_s0 + $0x38] sm:$0xff]  ;;  %v833_v18 = vpack.c.bf16 %v24_v15, %v23_v14  ;;  %196 = vst.msk [vmem:[#allocation2 + $0x40] sm:$0x3] %vm191_vm2, %v914_v20  ;;  %197 = vst.msk [vmem:[#allocation2 + $0x50] sm:$0x3] %vm191_vm2, %v914_v20  ;;  %s915_s0 = smov 118  }
   0x7   :  { %855 = vmatpush3.bf16.msra.mxu0 %v906_v1  ;;  %893 = vmatpush3.bf16.msra.mxu1 %v906_v1  ;;  %v835_v19 = vpack.c.bf16 %v28_v17, %v27_v16  ;;  %198 = vst.msk [vmem:[#allocation2 + $0x60] sm:$0x3] %vm191_vm2, %v914_v20  ;;  %199 = vst.msk [vmem:[#allocation2 + $0x70] sm:$0x3] %vm191_vm2, %v914_v20  ;;  %s916_s1 = smov 108   ;;  %vm414_vm6 = vcmask 156752  }
   0x8   :  { %856 = vmatprep.subr.bf16.mxu0 %v907_v3  ;;  %887 = vmatprep.subr.bf16.mxu1 %v907_v3  ;;  %200 = vst.msk [vmem:[#allocation2 + $0xa] sm:$0x3] %vm191_vm2, %v914_v20  ;;  %201 = vst.msk [vmem:[#allocation2 + $0x1a] sm:$0x3] %vm191_vm2, %v914_v20  ;;  %vm412_vm7 = vcmask 162897   ;;  %vm577_vm8 = vcmask 320752  }
   0x9   :  { %203 = vst.msk [vmem:[#allocation2 + $0x3a] sm:$0x3] %vm191_vm2, %v914_v20  ;;  %204 = vst.msk [vmem:[#allocation2 + $0x4a] sm:$0x3] %vm191_vm2, %v914_v20  ;;  %vm575_vm9 = vcmask 326896   ;;  %vm657_vm10 = vcmask 1041409  }
   0xa   :  { %205 = vst.msk [vmem:[#allocation2 + $0x5a] sm:$0x3] %vm191_vm2, %v914_v20  ;;  %206 = vst.msk [vmem:[#allocation2 + $0x6a] sm:$0x3] %vm191_vm2, %v914_v20  ;;  %vm659_vm11 = vcmask 1042434   ;;  %vm661_vm12 = vcmask 1043459  }
   0xb   :  { %857 = vmatpush3.bf16.msra.mxu0 %v907_v3  ;;  %894 = vmatpush3.bf16.msra.mxu1 %v907_v3  ;;  %207 = vst.msk [vmem:[#allocation2 + $0x7a] sm:$0x3] %vm191_vm2, %v914_v20  ;;  %vm663_vm13 = vcmask 1044484   ;;  %vm665_vm14 = vcmask 1045509   ;;  %vm667_vm15 = vcmask 1046534   ;;  %vm917_vm0 = vmmov 0  }
   0xc   :  { %858 = vmatprep.subr.bf16.mxu0 %v908_v8  ;;  %888 = vmatprep.subr.bf16.mxu1 %v908_v8  ;;  %vm235_vm2 = vcmask 74752  }
   0xf   :  { %859 = vmatpush3.bf16.msra.mxu0 %v908_v8  ;;  %895 = vmatpush3.bf16.msra.mxu1 %v908_v8 }
  0x10   :  { %860 = vmatprep.subr.bf16.mxu0 %v909_v11  ;;  %889 = vmatprep.subr.bf16.mxu1 %v909_v11 }
  0x13   :  { %861 = vmatpush3.bf16.msra.mxu0 %v909_v11  ;;  %896 = vmatpush3.bf16.msra.mxu1 %v909_v11 }
  0x14   :  { %862 = vmatprep.subr.bf16.mxu0 %v910_v12  ;;  %890 = vmatprep.subr.bf16.mxu1 %v910_v12 }
  0x17   :  { %863 = vmatpush3.bf16.msra.mxu0 %v910_v12  ;;  %897 = vmatpush3.bf16.msra.mxu1 %v910_v12 }
  0x18   :  { %864 = vmatprep.subr.bf16.mxu0 %v911_v13  ;;  %891 = vmatprep.subr.bf16.mxu1 %v911_v13 }
  0x1b   :  { %865 = vmatpush3.bf16.msra.mxu0 %v911_v13  ;;  %898 = vmatpush3.bf16.msra.mxu1 %v911_v13 }
  0x1c   :  { %874 = vmatprep.subr.mxu1 %v914_v20 }
  0x1e   :  { %867 = vmatmul.mubr.msk.bf16.vlgmr.msra.gmra.mxu0 %vm109_vm1, %v833_v18  ;;  %871 = vmatmul.mubr.msk.bf16.vlgmr.msra.gmra.mxu1 %vm109_vm1, %v835_v19  ;;  %vm669_vm1 = vcmask 1047559  }
  0x1f   :  { %882 = vmatprep.mubr.msk.f32.mxu1 %vm917_vm0, %v914_v20 }
  0xde   :  { %v868_v21 = vpop.f32.mrf.mxu0  ;;  %v872_v22 = vpop.f32.mrf.mxu1 }
  0xdf   :  { %211 = vst.msk [vmem:[#allocation2 + $0x22] sm:$0xff] %vm208_vm3, %v868_v21  ;;  %215 = vst.msk [vmem:[#allocation2 + $0x62] sm:$0xff] %vm208_vm3, %v872_v22 }
  0xe0   :  { %v160_v23 = vpop.f32.mrf.mxu0  ;;  %v176_v24 = vpop.f32.mrf.mxu1 }
  0xe1   :  { %209 = vst.msk [vmem:[#allocation2 + $0x2] sm:$0xff] %vm208_vm3, %v160_v23  ;;  %213 = vst.msk [vmem:[#allocation2 + $0x42] sm:$0xff] %vm208_vm3, %v176_v24 }
  0xe2   :  { %v869_v25 = vpop.f32.mrf.mxu0  ;;  %v873_v26 = vpop.f32.mrf.mxu1 }
  0xe3   :  { %212 = vst.msk [vmem:[#allocation2 + $0x32] sm:$0xff] %vm208_vm3, %v869_v25  ;;  %216 = vst.msk [vmem:[#allocation2 + $0x72] sm:$0xff] %vm208_vm3, %v873_v26 }
  0xe4   :  { %v163_v27 = vpop.f32.mrf.mxu0  ;;  %v179_v28 = vpop.f32.mrf.mxu1 }
  0xe5   :  { %210 = vst.msk [vmem:[#allocation2 + $0x12] sm:$0xff] %vm208_vm3, %v163_v27  ;;  %214 = vst.msk [vmem:[#allocation2 + $0x52] sm:$0xff] %vm208_vm3, %v179_v28  ;;  %vm233_vm3 = vcmask 80898  }
  0xe6   :  { %v1038_v29 = vld [vmem:[#allocation2 + $0x28] sm:$0xf]  ;;  %v1040_v30 = vld [vmem:[#allocation2 + $0x20] sm:$0xff] }
  0xe7   :  { %v331_v31 = vrot.slane %v1038_v29, 1  ;;  %v330_v32 = vrot.slane %v1040_v30, 1  ;;  %v494_v34 = vrot.slane %v1038_v29, 2  ;;  %v493_v35 = vrot.slane %v1040_v30, 2  ;;  %v1049_v36 = vld [vmem:[#allocation2 + $0x68] sm:$0xf] }
  0xe8   :  { %v1051_v37 = vld [vmem:[#allocation2 + $0x60] sm:$0xff]  ;;  %v343_v38 = vrot.slane %v1049_v36, 1  ;;  %v1059_v42 = vld [vmem:[#allocation2 + $0x8] sm:$0xf]  ;;  %v506_v44 = vrot.slane %v1049_v36, 2 }
  0xe9   :  { %358 = vrot.lane.b32.xlu1 %v331_v31, %s915_s0  ;;  %v332_v33 = vsel %vm323_vm4, %v330_v32, %v331_v31  ;;  %v342_v39 = vrot.slane %v1051_v37, 1  ;;  %v495_v40 = vsel %vm486_vm5, %v493_v35, %v494_v34  ;;  %v505_v43 = vrot.slane %v1051_v37, 2  ;;  %v1071_v47 = vld [vmem:[#allocation2 + $0x48] sm:$0xf]  ;;  %v1073_v48 = vld [vmem:[#allocation2] sm:$0xff] }
  0xea   :  { %356 = vrot.lane.b32.xlu0 %v332_v33, %s915_s0  ;;  %v488_v45 = vrot.slane %v1059_v42, 2  ;;  %v337_v49 = vrot.slane %v1071_v47, 1  ;;  %v325_v50 = vrot.slane %v1059_v42, 1  ;;  %v324_v51 = vrot.slane %v1073_v48, 1  ;;  %v1081_v53 = vld [vmem:[#allocation2 + $0x38] sm:$0xf] }
  0xeb   :  { %v344_v41 = vsel %vm323_vm4, %v342_v39, %v343_v38  ;;  %v507_v46 = vsel %vm486_vm5, %v505_v43, %v506_v44  ;;  %v500_v52 = vrot.slane %v1071_v47, 2  ;;  %v487_v55 = vrot.slane %v1073_v48, 2  ;;  %v1088_v57 = vld [vmem:[#allocation2 + $0x40] sm:$0xff]  ;;  %v1099_v63 = vld [vmem:[#allocation2 + $0x78] sm:$0xf]  ;;  %v1101_v0 = vld [vmem:[#allocation2 + $0x30] sm:$0xff] }
  0xec   :  { %v326_v54 = vsel %vm323_vm4, %v324_v51, %v325_v50  ;;  %v334_v56 = vrot.slane %v1081_v53, 1  ;;  %v336_v59 = vrot.slane %v1088_v57, 1  ;;  %v497_v60 = vrot.slane %v1081_v53, 2  ;;  %v1104_v2 = vld [vmem:[#allocation2 + $0x18] sm:$0xf]  ;;  %v1116_v9 = vld [vmem:[#allocation2 + $0x70] sm:$0xff] }
  0xed   :  { %521 = vrot.lane.b32.xlu1 %v494_v34, %s916_s1  ;;  %v489_v58 = vsel %vm486_vm5, %v487_v55, %v488_v45  ;;  %v499_v62 = vrot.slane %v1088_v57, 2  ;;  %v346_v1 = vrot.slane %v1099_v63, 1  ;;  %v333_v4 = vrot.slane %v1101_v0, 1  ;;  %v1122_v12 = vld [vmem:[#allocation2 + $0x58] sm:$0xf]  ;;  %v1124_v13 = vld [vmem:[#allocation2 + $0x10] sm:$0xff] }
  0xee   :  { %519 = vrot.lane.b32.xlu0 %v495_v40, %s916_s1  ;;  %v338_v61 = vsel %vm323_vm4, %v336_v59, %v337_v49  ;;  %v328_v5 = vrot.slane %v1104_v2, 1  ;;  %v496_v7 = vrot.slane %v1101_v0, 2  ;;  %v491_v8 = vrot.slane %v1104_v2, 2  ;;  %v1133_v19 = vld [vmem:[#allocation2 + $0x50] sm:$0xff] }
  0xef   :  { %v501_v3 = vsel %vm486_vm5, %v499_v62, %v500_v52  ;;  %v335_v6 = vsel %vm323_vm4, %v333_v4, %v334_v56  ;;  %v345_v11 = vrot.slane %v1116_v9, 1  ;;  %v340_v14 = vrot.slane %v1122_v12, 1 }
  0xf0   :  { %v498_v10 = vsel %vm486_vm5, %v496_v7, %v497_v60  ;;  %v490_v16 = vrot.slane %v1124_v13, 2  ;;  %v503_v17 = vrot.slane %v1122_v12, 2  ;;  %v327_v18 = vrot.slane %v1124_v13, 1 }
  0xf1   :  { %374 = vrot.lane.b32.xlu1 %v343_v38, %s915_s0  ;;  %v347_v15 = vsel %vm323_vm4, %v345_v11, %v346_v1  ;;  %v339_v22 = vrot.slane %v1133_v19, 1  ;;  %v502_v25 = vrot.slane %v1133_v19, 2  ;;  %v509_v27 = vrot.slane %v1099_v63, 2 }
  0xf2   :  { %372 = vrot.lane.b32.xlu0 %v344_v41, %s915_s0  ;;  %v492_v21 = vsel %vm486_vm5, %v490_v16, %v491_v8  ;;  %v329_v23 = vsel %vm323_vm4, %v327_v18, %v328_v5  ;;  %v508_v28 = vrot.slane %v1116_v9, 2 }
  0xf3   :  { %v341_v24 = vsel %vm323_vm4, %v339_v22, %v340_v14  ;;  %v504_v26 = vsel %vm486_vm5, %v502_v25, %v503_v17  ;;  %vm706_vm4 = vcmask 80896  }
  0xf4   :  { %v510_v31 = vsel %vm486_vm5, %v508_v28, %v509_v27 }
  0xf5   :  { %513 = vrot.lane.b32.xlu1 %v488_v45, %s916_s1 }
  0xf6   :  { %535 = vrot.lane.b32.xlu0 %v507_v46, %s916_s1 }
  0xf9   :  { %366 = vrot.lane.b32.xlu1 %v337_v49, %s915_s0 }
  0xfa   :  { %350 = vrot.lane.b32.xlu0 %v325_v50, %s915_s0 }
  0xfd   :  { %529 = vrot.lane.b32.xlu1 %v500_v52, %s916_s1 }
  0xfe   :  { %348 = vrot.lane.b32.xlu0 %v326_v54, %s915_s0 }
 0x101   :  { %362 = vrot.lane.b32.xlu1 %v334_v56, %s915_s0 }
 0x102   :  { %511 = vrot.lane.b32.xlu0 %v489_v58, %s916_s1 }
 0x105   :  { %525 = vrot.lane.b32.xlu1 %v497_v60, %s916_s1 }
 0x106   :  { %364 = vrot.lane.b32.xlu0 %v338_v61, %s915_s0 }
 0x109   :  { %378 = vrot.lane.b32.xlu1 %v346_v1, %s915_s0 }
 0x10a   :  { %527 = vrot.lane.b32.xlu0 %v501_v3, %s916_s1 }
 0x10d   :  { %354 = vrot.lane.b32.xlu1 %v328_v5, %s915_s0 }
 0x10e   :  { %360 = vrot.lane.b32.xlu0 %v335_v6, %s915_s0 }
 0x111   :  { %517 = vrot.lane.b32.xlu1 %v491_v8, %s916_s1 }
 0x112   :  { %523 = vrot.lane.b32.xlu0 %v498_v10, %s916_s1 }
 0x115   :  { %370 = vrot.lane.b32.xlu1 %v340_v14, %s915_s0 }
 0x116   :  { %376 = vrot.lane.b32.xlu0 %v347_v15, %s915_s0 }
 0x119   :  { %533 = vrot.lane.b32.xlu1 %v503_v17, %s916_s1 }
 0x11a   :  { %515 = vrot.lane.b32.xlu0 %v492_v21, %s916_s1 }
 0x11d   :  { %352 = vrot.lane.b32.xlu1 %v329_v23, %s915_s0 }
 0x11e   :  { %368 = vrot.lane.b32.xlu0 %v341_v24, %s915_s0 }
 0x121   :  { %537 = vrot.lane.b32.xlu1 %v506_v44, %s916_s1 }
 0x122   :  { %531 = vrot.lane.b32.xlu0 %v504_v26, %s916_s1 }
 0x125   :  { %541 = vrot.lane.b32.xlu1 %v509_v27, %s916_s1 }
 0x126   :  { %539 = vrot.lane.b32.xlu0 %v510_v31, %s916_s1 }
 0x15b   :  { %v359_v32 = vpop.permute.xlu1 %358 }
 0x15c   :  { %v401_v33 = vadd.f32 %v359_v32, %v1038_v29  ;;  %v357_v34 = vpop.permute.xlu0 %356 }
 0x15d   :  { %v400_v35 = vadd.f32 %v357_v34, %v1040_v30 }
 0x15e   :  { %v433_v38 = vsel %vm414_vm6, %v401_v33, -inf }
 0x15f   :  { %v432_v39 = vsel %vm412_vm7, %v400_v35, -inf  ;;  %v522_v40 = vpop.permute.xlu1 %521 }
 0x160   :  { %v434_v41 = vmax.f32 %v432_v39, %v433_v38  ;;  %v520_v43 = vpop.permute.xlu0 %519  ;;  %v564_v59 = vadd.f32 %v522_v40, %v401_v33 }
 0x161   :  { %v563_v60 = vadd.f32 %v520_v43, %v400_v35 }
 0x162   :  { %v596_v4 = vsel %vm577_vm8, %v564_v59, -inf  ;;  %v435_v26 = vrot.slane %v434_v41, 4 }
 0x163   :  { %v375_v44 = vpop.permute.xlu1 %374  ;;  %v595_v5 = vsel %vm575_vm9, %v563_v60, -inf }
 0x164   :  { %v1159_v45 = vadd.f32 %v375_v44, %v1049_v36  ;;  %v373_v46 = vpop.permute.xlu0 %372  ;;  %v597_v16 = vmax.f32 %v595_v5, %v596_v4  ;;  %v436_v40 = vmax.f32 %v434_v41, %v435_v26 }
 0x165   :  { %v1162_v49 = vadd.f32 %v373_v46, %v1051_v37 }
 0x166   :  { %v469_v50 = vsel %vm414_vm6, %v1159_v45, -inf  ;;  %v598_v27 = vrot.slane %v597_v16, 4 }
 0x167   :  { %v468_v51 = vsel %vm412_vm7, %v1162_v49, -inf  ;;  %v514_v52 = vpop.permute.xlu1 %513 }
 0x168   :  { %v470_v54 = vmax.f32 %v468_v51, %v469_v50  ;;  %v1168_v55 = vpop.permute.xlu0 %535  ;;  %v599_v43 = vmax.f32 %v597_v16, %v598_v27 }
 0x16a   :  { %v471_v44 = vrot.slane %v470_v54, 4 }
 0x16b   :  { %v367_v56 = vpop.permute.xlu1 %366 }
 0x16c   :  { %v351_v58 = vpop.permute.xlu0 %350  ;;  %v405_v17 = vadd.f32 %v367_v56, %v1071_v47  ;;  %v472_v4 = vmax.f32 %v470_v54, %v471_v44 }
 0x16d   :  { %v397_v61 = vadd.f32 %v351_v58, %v1059_v42 }
 0x16e   :  { %v451_v28 = vsel %vm414_vm6, %v405_v17, -inf }
 0x16f   :  { %v530_v62 = vpop.permute.xlu1 %529  ;;  %v415_v6 = vsel %vm414_vm6, %v397_v61, -inf  ;;  %v560_v10 = vadd.f32 %v514_v52, %v397_v61 }
 0x170   :  { %v349_v1 = vpop.permute.xlu0 %348  ;;  %v568_v46 = vadd.f32 %v530_v62, %v405_v17 }
 0x171   :  { %v396_v3 = vadd.f32 %v349_v1, %v1073_v48  ;;  %v578_v22 = vsel %vm577_vm8, %v560_v10, -inf  ;;  %v437_v1 = vrot.slane %v436_v40, 2 }
 0x172   :  { %v614_v5 = vsel %vm577_vm8, %v568_v46, -inf }
 0x173   :  { %v413_v7 = vsel %vm412_vm7, %v396_v3, -inf  ;;  %v363_v8 = vpop.permute.xlu1 %362 }
 0x174   :  { %v416_v11 = vmax.f32 %v413_v7, %v415_v6  ;;  %v512_v14 = vpop.permute.xlu0 %511  ;;  %v403_v51 = vadd.f32 %v363_v8, %v1081_v53 }
 0x175   :  { %v559_v15 = vadd.f32 %v512_v14, %v396_v3  ;;  %v600_v3 = vrot.slane %v599_v43, 2 }
 0x176   :  { %v417_v31 = vrot.slane %v416_v11, 4  ;;  %v442_v6 = vsel %vm414_vm6, %v403_v51, -inf }
 0x177   :  { %v576_v18 = vsel %vm575_vm9, %v559_v15, -inf  ;;  %v526_v21 = vpop.permute.xlu1 %525 }
 0x178   :  { %v365_v23 = vpop.permute.xlu0 %364  ;;  %v579_v24 = vmax.f32 %v576_v18, %v578_v22  ;;  %v418_v50 = vmax.f32 %v416_v11, %v417_v31  ;;  %v566_v8 = vadd.f32 %v526_v21, %v403_v51  ;;  %v438_v18 = vmax.f32 %v436_v40, %v437_v1 }
 0x179   :  { %v404_v25 = vadd.f32 %v365_v23, %v1088_v57  ;;  %v601_v22 = vmax.f32 %v599_v43, %v600_v3  ;;  %v571_v43 = vadd.f32 %v1168_v55, %v1162_v49 }
 0x17a   :  { %v580_v38 = vrot.slane %v579_v24, 4  ;;  %v419_v41 = vrot.slane %v418_v50, 2 }
 0x17b   :  { %v450_v32 = vsel %vm412_vm7, %v404_v25, -inf  ;;  %v379_v33 = vpop.permute.xlu1 %378  ;;  %v602_v40 = vrot.slane %v601_v22, 1 }
 0x17c   :  { %v452_v34 = vmax.f32 %v450_v32, %v451_v28  ;;  %v528_v35 = vpop.permute.xlu0 %527  ;;  %v581_v58 = vmax.f32 %v579_v24, %v580_v38  ;;  %v473_v24 = vrot.slane %v472_v4, 2  ;;  %v420_v54 = vmax.f32 %v418_v50, %v419_v41 }
 0x17d   :  { %v567_v39 = vadd.f32 %v528_v35, %v404_v25  ;;  %v1189_v25 = vadd.f32 %v379_v33, %v1099_v63  ;;  %v605_v28 = vsel %vm577_vm8, %v566_v8, -inf }
 0x17e   :  { %v453_v59 = vrot.slane %v452_v34, 4  ;;  %v582_v15 = vrot.slane %v581_v58, 2  ;;  %v1198_v44 = vmax.f32 %v472_v4, %v473_v24  ;;  %v421_v46 = vrot.slane %v420_v54, 1 }
 0x17f   :  { %v355_v52 = vpop.permute.xlu1 %354  ;;  %v613_v60 = vsel %vm575_vm9, %v567_v39, -inf  ;;  %v439_v39 = vrot.slane %v438_v18, 1  ;;  %v478_v50 = vsel %vm414_vm6, %v1189_v25, -inf  ;;  %v1209_v4 = vmax.f32 %v601_v22, %v602_v40 }
 0x180   :  { %v361_v56 = vpop.permute.xlu0 %360  ;;  %v615_v10 = vmax.f32 %v613_v60, %v614_v5  ;;  %v454_v16 = vmax.f32 %v452_v34, %v453_v59  ;;  %v583_v32 = vmax.f32 %v581_v58, %v582_v15  ;;  %v399_v59 = vadd.f32 %v355_v52, %v1104_v2 }
 0x181   :  { %v402_v61 = vadd.f32 %v361_v56, %v1101_v0  ;;  %v1207_v55 = vmax.f32 %v438_v18, %v439_v39  ;;  %v631_v5 = vsel %vm575_vm9, %v571_v43, -inf }
 0x182   :  { %v616_v21 = vrot.slane %v615_v10, 4  ;;  %v455_v35 = vrot.slane %v454_v16, 2  ;;  %v584_v1 = vrot.slane %v583_v32, 1 }
 0x183   :  { %v441_v62 = vsel %vm412_vm7, %v402_v61, -inf  ;;  %v518_v7 = vpop.permute.xlu1 %517 }
 0x184   :  { %v443_v11 = vmax.f32 %v441_v62, %v442_v6  ;;  %v524_v14 = vpop.permute.xlu0 %523  ;;  %v617_v58 = vmax.f32 %v615_v10, %v616_v21  ;;  %v1205_v3 = vmax.f32 %v454_v16, %v455_v35  ;;  %v475_v6 = vrot.slane %v1198_v44, 1 }
 0x185   :  { %v565_v17 = vadd.f32 %v524_v14, %v402_v61  ;;  %v1213_v62 = vmax.f32 %v420_v54, %v421_v46  ;;  %v562_v8 = vadd.f32 %v518_v7, %v399_v59  ;;  %v424_v14 = vsel %vm414_vm6, %v399_v59, -inf }
 0x186   :  { %v444_v23 = vrot.slane %v443_v11, 4  ;;  %v1218_v18 = vmax.f32 %v583_v32, %v584_v1  ;;  %v457_v22 = vrot.slane %v1205_v3, 1 }
 0x187   :  { %v604_v26 = vsel %vm575_vm9, %v565_v17, -inf  ;;  %v371_v27 = vpop.permute.xlu1 %370 }
 0x188   :  { %v377_v31 = vpop.permute.xlu0 %376  ;;  %v445_v38 = vmax.f32 %v443_v11, %v444_v23  ;;  %v606_v33 = vmax.f32 %v604_v26, %v605_v28  ;;  %v407_v52 = vadd.f32 %v371_v27, %v1122_v12  ;;  %v618_v11 = vrot.slane %v617_v58, 2 }
 0x189   :  { %v1194_v34 = vadd.f32 %v377_v31, %v1116_v9  ;;  %v587_v28 = vsel %vm577_vm8, %v562_v8, -inf }
 0x18a   :  { %v446_v49 = vrot.slane %v445_v38, 2  ;;  %v607_v41 = vrot.slane %v606_v33, 4  ;;  %v460_v21 = vsel %vm414_vm6, %v407_v52, -inf  ;;  %v1228_v39 = vmax.f32 %v617_v58, %v618_v11 }
 0x18b   :  { %v477_v51 = vsel %vm412_vm7, %v1194_v34, -inf  ;;  %v534_v56 = vpop.permute.xlu1 %533  ;;  %vm730_vm6 = vcmask 244736  }
 0x18c   :  { %v479_v60 = vmax.f32 %v477_v51, %v478_v50  ;;  %v516_v61 = vpop.permute.xlu0 %515  ;;  %v1221_v23 = vmax.f32 %v445_v38, %v446_v49  ;;  %v608_v54 = vmax.f32 %v606_v33, %v607_v41  ;;  %v570_v7 = vadd.f32 %v534_v56, %v407_v52 }
 0x18e   :  { %v480_v15 = vrot.slane %v479_v60, 4  ;;  %v448_v59 = vrot.slane %v1221_v23, 1  ;;  %v623_v1 = vsel %vm577_vm8, %v570_v7, -inf }
 0x18f   :  { %v353_v10 = vpop.permute.xlu1 %352 }
 0x190   :  { %v398_v16 = vadd.f32 %v353_v10, %v1124_v13  ;;  %v369_v17 = vpop.permute.xlu0 %368  ;;  %v481_v40 = vmax.f32 %v479_v60, %v480_v15 }
 0x191   :  { %v406_v24 = vadd.f32 %v369_v17, %v1133_v19 }
 0x192   :  { %v423_v26 = vsel %vm412_vm7, %v398_v16, -inf  ;;  %v561_v27 = vadd.f32 %v516_v61, %v398_v16  ;;  %v609_v61 = vrot.slane %v608_v54, 2  ;;  %v482_v10 = vrot.slane %v481_v40, 2 }
 0x193   :  { %v425_v31 = vmax.f32 %v423_v26, %v424_v14  ;;  %v459_v35 = vsel %vm412_vm7, %v406_v24, -inf  ;;  %v538_v32 = vpop.permute.xlu1 %537  ;;  %vm807_vm7 = vcmask 31744  }
 0x194   :  { %v586_v38 = vsel %vm575_vm9, %v561_v27, -inf  ;;  %v461_v43 = vmax.f32 %v459_v35, %v460_v21  ;;  %v532_v46 = vpop.permute.xlu0 %531  ;;  %v572_v51 = vadd.f32 %v538_v32, %v1159_v45  ;;  %v610_v26 = vmax.f32 %v608_v54, %v609_v61 }
 0x195   :  { %v426_v33 = vrot.slane %v425_v31, 4  ;;  %v588_v50 = vmax.f32 %v586_v38, %v587_v28  ;;  %v569_v56 = vadd.f32 %v532_v46, %v406_v24 }
 0x196   :  { %v462_v49 = vrot.slane %v461_v43, 4  ;;  %v632_v58 = vsel %vm577_vm8, %v572_v51, -inf  ;;  %v620_v51 = vrot.slane %v1228_v39, 1 }
 0x197   :  { %v427_v41 = vmax.f32 %v425_v31, %v426_v33  ;;  %v589_v8 = vrot.slane %v588_v50, 4  ;;  %v622_v60 = vsel %vm575_vm9, %v569_v56, -inf  ;;  %v542_v52 = vpop.permute.xlu1 %541  ;;  %v633_v14 = vmax.f32 %v631_v5, %v632_v58 }
 0x198   :  { %v463_v11 = vmax.f32 %v461_v43, %v462_v49  ;;  %v624_v15 = vmax.f32 %v622_v60, %v623_v1  ;;  %v540_v45 = vpop.permute.xlu0 %539  ;;  %v574_v24 = vadd.f32 %v542_v52, %v1189_v25  ;;  %v458_v25 = vmax.f32 %v1205_v3, %v457_v22 }
 0x199   :  { %v428_v16 = vrot.slane %v427_v41, 2  ;;  %v590_v17 = vmax.f32 %v588_v50, %v589_v8  ;;  %v573_v7 = vadd.f32 %v540_v45, %v1194_v34  ;;  %v634_v28 = vrot.slane %v633_v14, 4 }
 0x19a   :  { %v464_v27 = vrot.slane %v463_v11, 2  ;;  %v625_v21 = vrot.slane %v624_v15, 4  ;;  %v641_v32 = vsel %vm577_vm8, %v574_v24, -inf  ;;  %v483_v34 = vmax.f32 %v481_v40, %v482_v10 }
 0x19b   :  { %v429_v31 = vmax.f32 %v427_v41, %v428_v16  ;;  %v591_v35 = vrot.slane %v590_v17, 2  ;;  %v640_v5 = vsel %vm575_vm9, %v573_v7, -inf  ;;  %v635_v43 = vmax.f32 %v633_v14, %v634_v28 }
 0x19c   :  { %v465_v38 = vmax.f32 %v463_v11, %v464_v27  ;;  %v626_v46 = vmax.f32 %v624_v15, %v625_v21  ;;  %v642_v33 = vmax.f32 %v640_v5, %v641_v32  ;;  %v449_v49 = vmax.f32 %v1221_v23, %v448_v59  ;;  %v722_v23 = vld [vmem:[%s1336_s3 + $0x18] sm:$0x3f]  ;;  %v721_v59 = vld [vmem:[%s1336_s3 + $0x10] sm:$0xff] }
 0x19d   :  { %v430_v50 = vrot.slane %v429_v31, 1  ;;  %v592_v54 = vmax.f32 %v590_v17, %v591_v35  ;;  %v636_v56 = vrot.slane %v635_v43, 2  ;;  %v611_v41 = vrot.slane %v610_v26, 1  ;;  %875 = vmatpush3.msk.msra.mxu1 %vm486_vm5, %v722_v23 }
 0x19e   :  { %v627_v61 = vrot.slane %v626_v46, 2  ;;  %v643_v1 = vrot.slane %v642_v33, 4  ;;  %v466_v60 = vrot.slane %v465_v38, 1  ;;  %v484_v3 = vrot.slane %v483_v34, 1  ;;  %876 = vmatprep.subr.mxu1 %v914_v20 }
 0x19f   :  { %v431_v8 = vmax.f32 %v429_v31, %v430_v50  ;;  %v593_v58 = vrot.slane %v592_v54, 1  ;;  %v637_v52 = vmax.f32 %v635_v43, %v636_v56  ;;  %v621_v17 = vmax.f32 %v1228_v39, %v620_v51  ;;  %v720_v39 = vld [vmem:[%s1336_s3 + $0x8] sm:$0xff]  ;;  %877 = vmatpush3.msra.mxu1 %v721_v59  ;;  %v719_v43 = vld [vmem:[%s1336_s3] sm:$0xff] }
 0x1a0   :  { %v628_v11 = vmax.f32 %v626_v46, %v627_v61  ;;  %v644_v14 = vmax.f32 %v642_v33, %v643_v1  ;;  %878 = vmatprep.subr.mxu1 %v914_v20  ;;  %v245_v50 = vsel %vm235_vm2, %v1104_v2, -inf  ;;  %v236_v51 = vsel %vm235_vm2, %v1059_v42, -inf }
 0x1a1   :  { %v594_v22 = vmax.f32 %v592_v54, %v593_v58  ;;  %v680_v40 = vsel %vm657_vm10, %v431_v8, %v1213_v62  ;;  %v638_v10 = vrot.slane %v637_v52, 1  ;;  %v612_v62 = vmax.f32 %v610_v26, %v611_v41  ;;  %879 = vmatpush3.msra.mxu1 %v720_v39 }
 0x1a2   :  { %v629_v15 = vrot.slane %v628_v11, 1  ;;  %v645_v45 = vrot.slane %v644_v14, 2  ;;  %v681_v16 = vsel %vm659_vm11, %v1207_v55, %v680_v40  ;;  %v467_v55 = vmax.f32 %v465_v38, %v466_v60  ;;  %880 = vmatprep.subr.mxu1 %v914_v20 }
 0x1a3   :  { %v696_v24 = vsel %vm657_vm10, %v594_v22, %v1218_v18  ;;  %v682_v7 = vsel %vm661_vm12, %v449_v49, %v681_v16  ;;  %v476_v18 = vmax.f32 %v1198_v44, %v475_v6  ;;  %v485_v26 = vmax.f32 %v483_v34, %v484_v3  ;;  %881 = vmatpush3.msra.mxu1 %v719_v43 }
 0x1a4   :  { %v630_v27 = vmax.f32 %v628_v11, %v629_v15  ;;  %v646_v28 = vmax.f32 %v644_v14, %v645_v45  ;;  %v697_v21 = vsel %vm659_vm11, %v1209_v4, %v696_v24  ;;  %v683_v35 = vsel %vm663_vm13, %v458_v25, %v682_v7 }
 0x1a5   :  { %v698_v31 = vsel %vm661_vm12, %v612_v62, %v697_v21  ;;  %v639_v32 = vmax.f32 %v637_v52, %v638_v10  ;;  %v684_v38 = vsel %vm665_vm14, %v467_v55, %v683_v35  ;;  %v244_v54 = vsel %vm233_vm3, %v1124_v13, -inf }
 0x1a6   :  { %v647_v5 = vrot.slane %v646_v28, 1  ;;  %v699_v4 = vsel %vm663_vm13, %v621_v17, %v698_v31  ;;  %v685_v6 = vsel %vm667_vm15, %v476_v18, %v684_v38  ;;  %v234_v56 = vsel %vm233_vm3, %v1073_v48, -inf }
 0x1a7   :  { %v700_v44 = vsel %vm665_vm14, %v630_v27, %v699_v4  ;;  %v1280_v25 = vsel %vm669_vm1, %v485_v26, %v685_v6  ;;  %v246_v20 = vmax.f32 %v244_v54, %v245_v50  ;;  %v254_v61 = vsel %vm235_vm2, %v1038_v29, -inf }
 0x1a8   :  { %v648_v46 = vmax.f32 %v646_v28, %v647_v5  ;;  %v701_v33 = vsel %vm667_vm15, %v639_v32, %v700_v44  ;;  %v253_v1 = vsel %vm233_vm3, %v1040_v30, -inf  ;;  %v237_v49 = vmax.f32 %v234_v56, %v236_v51 }
 0x1a9   :  { %v247_v41 = vrot.slane %v246_v20, 4  ;;  %v255_v8 = vmax.f32 %v253_v1, %v254_v61  ;;  %v263_v2 = vsel %vm235_vm2, %v1081_v53, -inf  ;;  %v262_v13 = vsel %vm233_vm3, %v1101_v0, -inf }
 0x1aa   :  { %v702_v34 = vsel %vm669_vm1, %v648_v46, %v701_v33  ;;  %v238_v42 = vrot.slane %v237_v49, 4  ;;  %v272_v48 = vsel %vm235_vm2, %v1071_v47, -inf  ;;  %v271_v58 = vsel %vm233_vm3, %v1088_v57, -inf }
 0x1ab   :  { %703 = vrot.lane.b32.xlu0 %v702_v34, %s915_s0  ;;  %v264_v29 = vmax.f32 %v262_v13, %v263_v2  ;;  %v248_v60 = vmax.f32 %v246_v20, %v247_v41  ;;  %v256_v52 = vrot.slane %v255_v8, 4  ;;  %v273_v11 = vmax.f32 %v271_v58, %v272_v48 }
 0x1ac   :  { %v239_v30 = vmax.f32 %v237_v49, %v238_v42  ;;  %v281_v14 = vsel %vm235_vm2, %v1122_v12, -inf  ;;  %v280_v53 = vsel %vm233_vm3, %v1133_v19, -inf  ;;  %v290_v47 = vsel %vm235_vm2, %v1049_v36, -inf }
 0x1ad   :  { %v265_v3 = vrot.slane %v264_v29, 4  ;;  %v249_v0 = vrot.slane %v248_v60, 2  ;;  %v257_v22 = vmax.f32 %v255_v8, %v256_v52  ;;  %v289_v57 = vsel %vm233_vm3, %v1051_v37, -inf }
 0x1ae   :  { %v240_v40 = vrot.slane %v239_v30, 2  ;;  %v282_v10 = vmax.f32 %v280_v53, %v281_v14  ;;  %v274_v15 = vrot.slane %v273_v11, 4  ;;  %v291_v59 = vmax.f32 %v289_v57, %v290_v47 }
 0x1af   :  { %v266_v45 = vmax.f32 %v264_v29, %v265_v3  ;;  %v250_v16 = vmax.f32 %v248_v60, %v249_v0  ;;  %v258_v23 = vrot.slane %v257_v22, 2  ;;  %v299_v12 = vsel %vm235_vm2, %v1099_v63, -inf  ;;  %v828_v29 = vld [vmem:[%s1337_s2] ss:$0 sm:$0xff] }
 0x1b0   :  { %v298_v19 = vsel %vm233_vm3, %v1116_v9, -inf  ;;  %v241_v17 = vmax.f32 %v239_v30, %v240_v40  ;;  %v283_v62 = vrot.slane %v282_v10, 4  ;;  %v275_v24 = vmax.f32 %v273_v11, %v274_v15  ;;  %v829_v3 = vld [vmem:[%s1338_s4] ss:$0 sm:$0xff] }
 0x1b1   :  { %v267_v36 = vrot.slane %v266_v45, 2  ;;  %v300_v7 = vmax.f32 %v298_v19, %v299_v12  ;;  %v251_v55 = vrot.slane %v250_v16, 1  ;;  %v259_v37 = vmax.f32 %v257_v22, %v258_v23 }
 0x1b2   :  { %v292_v27 = vrot.slane %v291_v59, 4  ;;  %v242_v28 = vrot.slane %v241_v17, 1  ;;  %v284_v21 = vmax.f32 %v282_v10, %v283_v62  ;;  %v276_v39 = vrot.slane %v275_v24, 2 }
 0x1b3   :  { %v268_v18 = vmax.f32 %v266_v45, %v267_v36  ;;  %v252_v26 = vmax.f32 %v250_v16, %v251_v55  ;;  %v301_v31 = vrot.slane %v300_v7, 4  ;;  %v260_v35 = vrot.slane %v259_v37, 1 }
 0x1b4   :  { %v293_v32 = vmax.f32 %v291_v59, %v292_v27  ;;  %v243_v63 = vmax.f32 %v241_v17, %v242_v28  ;;  %v285_v5 = vrot.slane %v284_v21, 2  ;;  %v277_v4 = vmax.f32 %v275_v24, %v276_v39 }
 0x1b5   :  { %v269_v9 = vrot.slane %v268_v18, 1  ;;  %v302_v43 = vmax.f32 %v300_v7, %v301_v31  ;;  %v261_v44 = vmax.f32 %v259_v37, %v260_v35  ;;  %vm708_vm5 = vcmask 162816  }
 0x1b6   :  { %v658_v38 = vsel %vm657_vm10, %v252_v26, %v243_v63  ;;  %v294_v6 = vrot.slane %v293_v32, 2  ;;  %v286_v46 = vmax.f32 %v284_v21, %v285_v5  ;;  %v278_v33 = vrot.slane %v277_v4, 1 }
 0x1b7   :  { %v660_v34 = vsel %vm659_vm11, %v261_v44, %v658_v38  ;;  %v270_v50 = vmax.f32 %v268_v18, %v269_v9  ;;  %v303_v54 = vrot.slane %v302_v43, 2 }
 0x1b8   :  { %v295_v51 = vmax.f32 %v293_v32, %v294_v6  ;;  %v287_v56 = vrot.slane %v286_v46, 1  ;;  %v279_v61 = vmax.f32 %v277_v4, %v278_v33 }
 0x1b9   :  { %v662_v20 = vsel %vm661_vm12, %v270_v50, %v660_v34  ;;  %v304_v1 = vmax.f32 %v302_v43, %v303_v54 }
 0x1ba   :  { %v296_v49 = vrot.slane %v295_v51, 1  ;;  %v664_v41 = vsel %vm663_vm13, %v279_v61, %v662_v20  ;;  %v288_v8 = vmax.f32 %v286_v46, %v287_v56 }
 0x1bb   :  { %v305_v2 = vrot.slane %v304_v1, 1 }
 0x1bc   :  { %v666_v13 = vsel %vm665_vm14, %v288_v8, %v664_v41  ;;  %v297_v42 = vmax.f32 %v295_v51, %v296_v49 }
 0x1bd   :  { %v306_v58 = vmax.f32 %v304_v1, %v305_v2 }
 0x1be   :  { %v668_v48 = vsel %vm667_vm15, %v297_v42, %v666_v13 }
 0x1bf   :  { %v670_v60 = vsel %vm669_vm1, %v306_v58, %v668_v48 }
 0x1c0   :  { %v707_v30 = vsel %vm706_vm4, %v670_v60, %v1280_v25 }
 0x21d   :  { %v704_v52 = vpop.permute.xlu0 %703 }
 0x21e   :  { %v709_v11 = vsel %vm708_vm5, %v707_v30, %v704_v52 }
 0x21f   :  { %v717_v14 = vadd.f32 %v828_v29, %v709_v11 }
 0x221   :  { %912 = vtanh.f32 %v717_v14 }
 0x22e   :  { %v913_v53 = vpop.eup %912 }
 0x22f   :  { %883 = vmatmul.mubr.msk.f32.vlgmr.msra.gmra.mxu1 %vm730_vm6, %v913_v53 }
 0x2ef   :  { %v803_v0 = vpop.f32.mrf.mxu1 }
 0x2f0   :  { %v804_v22 = vadd.f32 %v829_v3, %v803_v0 }
 0x2f1   :  { %v884_v47 = vpop.f32.mrf.mxu1 }
 0x2f2   :  { %808 = vst.msk [vmem:[%s1339_s5] sm:$0xff] %vm807_vm7, %v804_v22 }

</bundles_post_ra>
